<compile_context>
chip_gen: v6e
topology: v6e:2x2x1
jax: 0.10.0
libtpu: 0.0.40
codegen_flags: <defaults>
</compile_context>

<pallas_src>
import functools

import jax
import jax.numpy as jnp
from jax.experimental import pallas as pl
from jax.experimental.pallas import tpu as pltpu


def _round_up(x, m):
    return ((x + m - 1) // m) * m


def _encoder_kernel(*refs):
    # refs = (x_ref, w0_ref, b0_ref, w1_ref, b1_ref, ..., o_ref)
    x_ref = refs[0]
    o_ref = refs[-1]
    wb_refs = refs[1:-1]

    h = x_ref[...]
    for i in range(0, len(wb_refs), 2):
        w_ref = wb_refs[i]        # (d_in_pad, d_out_pad), pre-transposed
        b_ref = wb_refs[i + 1]    # (1, d_out_pad)
        y = jnp.dot(h, w_ref[...], preferred_element_type=jnp.float32)
        y = y + b_ref[...].astype(jnp.float32)
        h = jnp.maximum(y, 0.0)   # ReLU
    o_ref[...] = h.astype(o_ref.dtype)


def prepare_encoder_params(params):
    """Pad + pre-transpose PyTorch-style (D_out, D_in) params ONCE.

    Returns list of (w_t, b) with w_t shaped (D_in_pad, D_out_pad) and
    b shaped (1, D_out_pad); padding is zero so forward numerics match the
    unpadded reference exactly.
    """
    prepared = []
    for (w, b) in params:
        d_out, d_in = w.shape
        d_in_pad = _round_up(d_in, 128)
        d_out_pad = _round_up(d_out, 128)
        w_t = jnp.zeros((d_in_pad, d_out_pad), w.dtype).at[:d_in, :d_out].set(w.T)
        b_p = jnp.zeros((1, d_out_pad), b.dtype).at[0, :d_out].set(b)
        prepared.append((w_t, b_p))
    return prepared


def _encoder_pallas(x_pad, prepared, *, tb):
    B_pad, d_in_pad = x_pad.shape
    d_out_pad = prepared[-1][0].shape[1]
    grid = (B_pad // tb,)

    in_specs = [pl.BlockSpec((tb, d_in_pad), lambda i: (i, 0))]
    flat_args = [x_pad]
    flops = 0
    bytes_accessed = x_pad.size * x_pad.dtype.itemsize + B_pad * d_out_pad * 4
    for (w_t, b_p) in prepared:
        # Weights/biases: full blocks, VMEM-resident across batch tiles.
        in_specs.append(pl.BlockSpec(w_t.shape, lambda i: (0, 0)))
        in_specs.append(pl.BlockSpec(b_p.shape, lambda i: (0, 0)))
        flat_args.extend([w_t, b_p])
        flops += 2 * B_pad * w_t.shape[0] * w_t.shape[1]
        bytes_accessed += (w_t.size * w_t.dtype.itemsize
                           + b_p.size * b_p.dtype.itemsize)

    return pl.pallas_call(
        _encoder_kernel,
        out_shape=jax.ShapeDtypeStruct((B_pad, d_out_pad), x_pad.dtype),
        grid_spec=pltpu.PrefetchScalarGridSpec(
            num_scalar_prefetch=0,
            grid=grid,
            in_specs=in_specs,
            out_specs=pl.BlockSpec((tb, d_out_pad), lambda i: (i, 0)),
        ),
        compiler_params=pltpu.CompilerParams(
            dimension_semantics=("parallel",),
        ),
        cost_estimate=pl.CostEstimate(
            flops=flops, transcendentals=0, bytes_accessed=bytes_accessed),
    )(*flat_args)


def make_encoder_forward(params, *, tb=128):
    """Build a jitted forward(x) for PyTorch-style params [(w, b), ...]."""
    prepared = prepare_encoder_params(params)   # one-time transpose/pad
    d_in = params[0][0].shape[1]
    d_out = params[-1][0].shape[0]
    d_in_pad = prepared[0][0].shape[0]

    @jax.jit
    def forward(x):
        B = x.shape[0]
        # Pad batch to a sublane multiple and pick the batch tile.
        if B <= tb:
            B_pad = _round_up(B, 8)
            tb_eff = B_pad
        else:
            B_pad = _round_up(B, tb)
            tb_eff = tb
        x_pad = jnp.zeros((B_pad, d_in_pad), x.dtype).at[:B, :d_in].set(x)
        out = _encoder_pallas(x_pad, prepared, tb=tb_eff)
        return out[:B, :d_out]

    return forward


def encoder_forward_ref(x, params):
    h = x
    for (w, b) in params:
        h = jnp.maximum(h @ w.T + b, 0.0)
    return h


def init_encoder_params(key, data_dim, compress_dims, embedding_dim):
    """PyTorch-Linear-like uniform init, deterministic given `key`."""
    dims = [data_dim] + list(compress_dims) + [embedding_dim]
    params = []
    for d_in, d_out in zip(dims[:-1], dims[1:]):
        key, kw, kb = jax.random.split(key, 3)
        bound = 1.0 / jnp.sqrt(jnp.float32(d_in))
        w = jax.random.uniform(kw, (d_out, d_in), minval=-bound, maxval=bound,
                               dtype=jnp.float32)
        b = jax.random.uniform(kb, (d_out,), minval=-bound, maxval=bound,
                               dtype=jnp.float32)
        params.append((w, b))
    return params


if __name__ == "__main__":
    # Small, deliberately non-128-aligned shapes to exercise the padding path.
    B = 6
    data_dim = 250
    compress_dims = (200,)
    embedding_dim = 120

    key = jax.random.PRNGKey(0)
    key, kx = jax.random.split(key)
    x = jax.random.normal(kx, (B, data_dim), dtype=jnp.float32)
    params = init_encoder_params(key, data_dim, compress_dims, embedding_dim)

    forward = make_encoder_forward(params)
    out = forward(x)
    jax.block_until_ready(out)

    ref = encoder_forward_ref(x, params)
    assert out.shape == (B, embedding_dim)
    assert jnp.allclose(out, ref, atol=1e-4, rtol=1e-4), "mismatch vs reference"

    print("KERNEL_OK")
</pallas_src>

<mosaic_0001>
module attributes {stable_mosaic.version = 11 : i64} {
  func.func @_encoder_kernel(%arg0: i32, %arg1: memref<8x256xf32, #tpu.memory_space<vmem>>, %arg2: memref<256x256xf32, #tpu.memory_space<vmem>>, %arg3: memref<1x256xf32, #tpu.memory_space<vmem>>, %arg4: memref<256x128xf32, #tpu.memory_space<vmem>>, %arg5: memref<1x128xf32, #tpu.memory_space<vmem>>, %arg6: memref<8x128xf32, #tpu.memory_space<vmem>>) attributes {dimension_semantics = [#tpu.dimension_semantics<parallel>], iteration_bounds = array<i64: 1>, scalar_prefetch = 0 : i64, scratch_operands = 0 : i64, tpu.core_type = #tpu.core_type<tc>, window_params = [{transform_indices = @transform_0, window_bounds = array<i64: 8, 256>}, {pipeline_mode = #tpu.pipeline_mode<synchronous>, transform_indices = @transform_1, window_bounds = array<i64: 256, 256>}, {pipeline_mode = #tpu.pipeline_mode<synchronous>, transform_indices = @transform_2, window_bounds = array<i64: 1, 256>}, {pipeline_mode = #tpu.pipeline_mode<synchronous>, transform_indices = @transform_3, window_bounds = array<i64: 256, 128>}, {pipeline_mode = #tpu.pipeline_mode<synchronous>, transform_indices = @transform_4, window_bounds = array<i64: 1, 128>}, {transform_indices = @transform_5, window_bounds = array<i64: 8, 128>}]} {
    %c0 = arith.constant 0 : index
    %c0_0 = arith.constant 0 : index
    %0 = vector.load %arg1[%c0, %c0_0] : memref<8x256xf32, #tpu.memory_space<vmem>>, vector<8x256xf32>
    %c0_1 = arith.constant 0 : index
    %c0_2 = arith.constant 0 : index
    %1 = vector.load %arg2[%c0_1, %c0_2] : memref<256x256xf32, #tpu.memory_space<vmem>>, vector<256x256xf32>
    %cst = arith.constant dense<0.000000e+00> : vector<8x256xf32>
    %2 = tpu.matmul %0, %1, %cst {dimension_numbers = #tpu.dot_dimension_numbers<[1], [0], [0], [1], [0, 0, 1, 1], [], []>} : vector<8x256xf32>, vector<256x256xf32>, vector<8x256xf32> -> vector<8x256xf32>
    %c0_3 = arith.constant 0 : index
    %c0_4 = arith.constant 0 : index
    %3 = vector.load %arg3[%c0_3, %c0_4] : memref<1x256xf32, #tpu.memory_space<vmem>>, vector<1x256xf32>
    %4 = vector.broadcast %3 : vector<1x256xf32> to vector<8x256xf32>
    %5 = arith.addf %2, %4 : vector<8x256xf32>
    %cst_5 = arith.constant 0.000000e+00 : f32
    %6 = vector.broadcast %cst_5 : f32 to vector<8x256xf32>
    %7 = arith.maximumf %5, %6 : vector<8x256xf32>
    %c0_6 = arith.constant 0 : index
    %c0_7 = arith.constant 0 : index
    %8 = vector.load %arg4[%c0_6, %c0_7] : memref<256x128xf32, #tpu.memory_space<vmem>>, vector<256x128xf32>
    %cst_8 = arith.constant dense<0.000000e+00> : vector<8x128xf32>
    %9 = tpu.matmul %7, %8, %cst_8 {dimension_numbers = #tpu.dot_dimension_numbers<[1], [0], [0], [1], [0, 0, 1, 1], [], []>} : vector<8x256xf32>, vector<256x128xf32>, vector<8x128xf32> -> vector<8x128xf32>
    %c0_9 = arith.constant 0 : index
    %c0_10 = arith.constant 0 : index
    %10 = vector.load %arg5[%c0_9, %c0_10] : memref<1x128xf32, #tpu.memory_space<vmem>>, vector<1x128xf32>
    %11 = vector.broadcast %10 : vector<1x128xf32> to vector<8x128xf32>
    %12 = arith.addf %9, %11 : vector<8x128xf32>
    %cst_11 = arith.constant 0.000000e+00 : f32
    %13 = vector.broadcast %cst_11 : f32 to vector<8x128xf32>
    %14 = arith.maximumf %12, %13 : vector<8x128xf32>
    %c0_12 = arith.constant 0 : index
    %c0_13 = arith.constant 0 : index
    %15 = vector.load %arg6[%c0_12, %c0_13] : memref<8x128xf32, #tpu.memory_space<vmem>>, vector<8x128xf32>
    tpu.vector_store %arg6[%c0_12, %c0_13], %14 {strides = array<i32>} : memref<8x128xf32, #tpu.memory_space<vmem>>, vector<8x128xf32>,
    return
  }
  func.func @transform_0(%arg0: i32) -> (i32, i32) {
    %c0_i32 = arith.constant 0 : i32
    %c0_i32_0 = arith.constant 0 : i32
    return %arg0, %c0_i32 : i32, i32
  }
  func.func @transform_1(%arg0: i32) -> (i32, i32) {
    %c0_i32 = arith.constant 0 : i32
    %c0_i32_0 = arith.constant 0 : i32
    %c0_i32_1 = arith.constant 0 : i32
    return %c0_i32, %c0_i32_0 : i32, i32
  }
  func.func @transform_2(%arg0: i32) -> (i32, i32) {
    %c0_i32 = arith.constant 0 : i32
    %c0_i32_0 = arith.constant 0 : i32
    %c0_i32_1 = arith.constant 0 : i32
    return %c0_i32, %c0_i32_0 : i32, i32
  }
  func.func @transform_3(%arg0: i32) -> (i32, i32) {
    %c0_i32 = arith.constant 0 : i32
    %c0_i32_0 = arith.constant 0 : i32
    %c0_i32_1 = arith.constant 0 : i32
    return %c0_i32, %c0_i32_0 : i32, i32
  }
  func.func @transform_4(%arg0: i32) -> (i32, i32) {
    %c0_i32 = arith.constant 0 : i32
    %c0_i32_0 = arith.constant 0 : i32
    %c0_i32_1 = arith.constant 0 : i32
    return %c0_i32, %c0_i32_0 : i32, i32
  }
  func.func @transform_5(%arg0: i32) -> (i32, i32) {
    %c0_i32 = arith.constant 0 : i32
    %c0_i32_0 = arith.constant 0 : i32
    return %arg0, %c0_i32 : i32, i32
  }
}

</mosaic_0001>

<bundles_post_ra>
// kernel: forward.1
= control target key start
LH: loop header
LB: loop body
LE: loop exit
PB: predicated region body
PF: predicated region fallthrough
CT: control target
= control target key end

     0   :  { %10 = vsyncpa [#allocation3], 0  ;;  %s494_s0 = inlined_call_operand.vmem [shape: f32[8,256], index: 0, kind: input, shape index: {}]   ;;  %s495_s1 = inlined_call_operand.hbm [shape: f32[256,256], index: 1, kind: input, shape index: {}]   ;;  %s496_s2 = inlined_call_operand.vmem [shape: f32[1,256], index: 2, kind: input, shape index: {}]   ;;  %s497_s3 = inlined_call_operand.hbm [shape: f32[256,128], index: 3, kind: input, shape index: {}]   ;;  %s498_s4 = inlined_call_operand.vmem [shape: f32[1,128], index: 4, kind: input, shape index: {}]   ;;  %s499_s5 = inlined_call_operand.hbm [shape: f32[8,128], index: 5, kind: output, shape index: {}]  }
   0x1   :  { %11 = vsyncpa [#allocation6], 0 }
   0x2   :  { %12 = vsyncpa [#allocation4], 0  ;;  %s436_s18 = smov [#allocation2]  }
   0x3   :  { %s20_s19 = sshll.u32 %s436_s18, 4  ;;  %s21_s19 = int_to_ptr.vmem [resolvable:$true] %s20_s19 }
   0x4   :  { %s378_s20 = scalar_lea.vmem %s21_s19, 8192  ;;  %p383_p1 = scmp.lt.s32.totalorder %s21_s19, %s21_s19 }
   0x5   :  { %p379_p0 = scmp.ne.s32.totalorder %s21_s19, %s378_s20  ;;  %p384_p2 = scmp.lt.s32.totalorder %s378_s20, %s378_s20 }
   0x7   :  { %p385_p3 = por %p384_p2, %p383_p1 }
   0x9   :  { %p386_p4 = pnand %p385_p3, %p379_p0 }
   0xb   :  { %389 = shalt.err (!%p386_p4)
}
   0xc   :  { %s437_s21 = smov 256   ;;  %s438_s22 = smov 16  }
   0xd   :  { %26 = dma.hbm_to_vmem [thread:$0]  %s495_s1, 8192, %s21_s19, [#allocation3], %s437_s21, %s437_s21, %s438_s22  }
   0xe   :  { %s439_s25 = smov [#allocation5]  }
   0xf   :  { %s34_s26 = sshll.u32 %s439_s25, 4  ;;  %s35_s26 = int_to_ptr.vmem [resolvable:$true] %s34_s26 }
  0x10   :  { %s398_s27 = scalar_lea.vmem %s35_s26, 4096  ;;  %p403_p6 = scmp.lt.s32.totalorder %s35_s26, %s35_s26 }
  0x11   :  { %p399_p5 = scmp.ne.s32.totalorder %s35_s26, %s398_s27  ;;  %p404_p7 = scmp.lt.s32.totalorder %s398_s27, %s398_s27 }
  0x13   :  { %p405_p8 = por %p404_p7, %p403_p6 }
  0x15   :  { %p406_p9 = pnand %p405_p8, %p399_p5 }
  0x17   :  { %409 = shalt.err (!%p406_p9)
}
  0x18   :  { %s440_s28 = smov 128   ;;  %s441_s29 = smov 8  }
  0x19   :  { %40 = dma.hbm_to_vmem [thread:$0]  %s497_s3, 4096, %s35_s26, [#allocation6], %s440_s28, %s440_s28, %s441_s29  }
  0x1a   :  { %430 = dma.done.wait [#allocation3], 8192  }
  0x1b   :  { %431 = vsyncadd [#allocation3], 4294959104 }
  0x1c   :  { %432 = dma.done.wait [#allocation6], 4096  }
  0x1d   :  { %433 = vsyncadd [#allocation6], 4294963200  ;;  %v82_v0 = vld [vmem:[#allocation2 + $0xf8] sm:$0xff]  ;;  %v81_v1 = vld [vmem:[#allocation2 + $0xf0] sm:$0xff]  ;;  %s442_s12 = smov [#allocation7]  }
  0x1e   :  { %v80_v2 = vld [vmem:[#allocation2 + $0xe8] sm:$0xff]  ;;  %127 = vmatprep.subr.mxu0 %v82_v0  ;;  %v79_v3 = vld [vmem:[#allocation2 + $0xe0] sm:$0xff]  ;;  %v78_v4 = vld [vmem:[#allocation2 + $0xd8] sm:$0xff] }
  0x1f   :  { %128 = vmatpush1.msra.mxu0 %v81_v1  ;;  %v77_v5 = vld [vmem:[#allocation2 + $0xd0] sm:$0xff]  ;;  %v76_v6 = vld [vmem:[#allocation2 + $0xc8] sm:$0xff]  ;;  %v75_v7 = vld [vmem:[#allocation2 + $0xc0] sm:$0xff] }
  0x20   :  { %129 = vmatprep.subr.mxu0 %v80_v2  ;;  %v74_v8 = vld [vmem:[#allocation2 + $0xb8] sm:$0xff]  ;;  %v73_v9 = vld [vmem:[#allocation2 + $0xb0] sm:$0xff]  ;;  %v72_v10 = vld [vmem:[#allocation2 + $0xa8] sm:$0xff] }
  0x21   :  { %130 = vmatpush1.msra.mxu0 %v79_v3  ;;  %v71_v11 = vld [vmem:[#allocation2 + $0xa0] sm:$0xff]  ;;  %v70_v12 = vld [vmem:[#allocation2 + $0x98] sm:$0xff]  ;;  %v69_v13 = vld [vmem:[#allocation2 + $0x90] sm:$0xff] }
  0x22   :  { %131 = vmatprep.subr.mxu0 %v78_v4  ;;  %v68_v14 = vld [vmem:[#allocation2 + $0x88] sm:$0xff]  ;;  %v67_v15 = vld [vmem:[#allocation2 + $0x80] sm:$0xff]  ;;  %v66_v16 = vld [vmem:[#allocation2 + $0x78] sm:$0xff] }
  0x23   :  { %132 = vmatpush1.msra.mxu0 %v77_v5  ;;  %v65_v17 = vld [vmem:[#allocation2 + $0x70] sm:$0xff]  ;;  %v64_v18 = vld [vmem:[#allocation2 + $0x68] sm:$0xff]  ;;  %v63_v19 = vld [vmem:[#allocation2 + $0x60] sm:$0xff] }
  0x24   :  { %133 = vmatprep.subr.mxu0 %v76_v6  ;;  %v62_v20 = vld [vmem:[#allocation2 + $0x58] sm:$0xff]  ;;  %v61_v21 = vld [vmem:[#allocation2 + $0x50] sm:$0xff]  ;;  %v60_v22 = vld [vmem:[#allocation2 + $0x48] sm:$0xff] }
  0x25   :  { %134 = vmatpush1.msra.mxu0 %v75_v7  ;;  %v59_v23 = vld [vmem:[#allocation2 + $0x40] sm:$0xff]  ;;  %v58_v24 = vld [vmem:[#allocation2 + $0x38] sm:$0xff]  ;;  %v50_v25 = vld [vmem:[%s494_s0 + $0x8] sm:$0xff] }
  0x26   :  { %135 = vmatprep.subr.mxu0 %v74_v8  ;;  %191 = vmatprep.mubr.f32.mxu0 %v50_v25  ;;  %v231_v26 = vld [vmem:[#allocation5 + $0xf8] sm:$0xff]  ;;  %v230_v28 = vld [vmem:[#allocation5 + $0xf0] sm:$0xff]  ;;  %v56_v31 = vld [vmem:[#allocation2 + $0x28] sm:$0xff] }
  0x27   :  { %136 = vmatpush1.msra.mxu0 %v73_v9  ;;  %v215_v27 = vld [vmem:[#allocation5 + $0x78] sm:$0xff]  ;;  %v57_v29 = vld [vmem:[#allocation2 + $0x30] sm:$0xff]  ;;  %328 = vmatprep.subr.mxu1 %v231_v26  ;;  %v229_v32 = vld [vmem:[#allocation5 + $0xe8] sm:$0xff] }
  0x28   :  { %137 = vmatprep.subr.mxu0 %v72_v10  ;;  %v214_v30 = vld [vmem:[#allocation5 + $0x70] sm:$0xff]  ;;  %329 = vmatpush3.msra.mxu1 %v215_v27  ;;  %v55_v33 = vld [vmem:[#allocation2 + $0x20] sm:$0xff]  ;;  %v213_v34 = vld [vmem:[#allocation5 + $0x68] sm:$0xff] }
  0x29   :  { %138 = vmatpush1.msra.mxu0 %v71_v11  ;;  %330 = vmatprep.subr.mxu1 %v230_v28  ;;  %v54_v35 = vld [vmem:[#allocation2 + $0x18] sm:$0xff]  ;;  %v228_v36 = vld [vmem:[#allocation5 + $0xe0] sm:$0xff]  ;;  %v53_v37 = vld [vmem:[#allocation2 + $0x10] sm:$0xff] }
  0x2a   :  { %139 = vmatprep.subr.mxu0 %v70_v12  ;;  %331 = vmatpush3.msra.mxu1 %v214_v30  ;;  %v212_v38 = vld [vmem:[#allocation5 + $0x60] sm:$0xff]  ;;  %v52_v39 = vld [vmem:[#allocation2 + $0x8] sm:$0xff]  ;;  %v227_v40 = vld [vmem:[#allocation5 + $0xd8] sm:$0xff] }
  0x2b   :  { %140 = vmatpush1.msra.mxu0 %v69_v13  ;;  %332 = vmatprep.subr.mxu1 %v229_v32  ;;  %v51_v41 = vld [vmem:[#allocation2] sm:$0xff]  ;;  %v211_v42 = vld [vmem:[#allocation5 + $0x58] sm:$0xff]  ;;  %v226_v44 = vld [vmem:[#allocation5 + $0xd0] sm:$0xff] }
  0x2c   :  { %141 = vmatprep.subr.mxu0 %v68_v14  ;;  %333 = vmatpush3.msra.mxu1 %v213_v34  ;;  %v114_v43 = vld [vmem:[#allocation2 + $0x1f8] sm:$0xff]  ;;  %v113_v45 = vld [vmem:[#allocation2 + $0x1f0] sm:$0xff]  ;;  %v112_v47 = vld [vmem:[#allocation2 + $0x1e8] sm:$0xff]  ;;  %v117_v34 = vlaneseq }
  0x2d   :  { %142 = vmatpush1.msra.mxu0 %v67_v15  ;;  %334 = vmatprep.subr.mxu1 %v228_v36  ;;  %v210_v46 = vld [vmem:[#allocation5 + $0x50] sm:$0xff]  ;;  %v225_v48 = vld [vmem:[#allocation5 + $0xc8] sm:$0xff]  ;;  %v111_v49 = vld [vmem:[#allocation2 + $0x1e0] sm:$0xff] }
  0x2e   :  { %143 = vmatprep.subr.mxu0 %v66_v16  ;;  %335 = vmatpush3.msra.mxu1 %v212_v38  ;;  %v209_v50 = vld [vmem:[#allocation5 + $0x48] sm:$0xff]  ;;  %v110_v51 = vld [vmem:[#allocation2 + $0x1d8] sm:$0xff]  ;;  %v224_v52 = vld [vmem:[#allocation5 + $0xc0] sm:$0xff] }
  0x2f   :  { %144 = vmatpush1.msra.mxu0 %v65_v17  ;;  %336 = vmatprep.subr.mxu1 %v227_v40  ;;  %v109_v53 = vld [vmem:[#allocation2 + $0x1d0] sm:$0xff]  ;;  %v208_v54 = vld [vmem:[#allocation5 + $0x40] sm:$0xff]  ;;  %v108_v55 = vld [vmem:[#allocation2 + $0x1c8] sm:$0xff] }
  0x30   :  { %145 = vmatprep.subr.mxu0 %v64_v18  ;;  %337 = vmatpush3.msra.mxu1 %v211_v42  ;;  %v223_v56 = vld [vmem:[#allocation5 + $0xb8] sm:$0xff]  ;;  %v107_v57 = vld [vmem:[#allocation2 + $0x1c0] sm:$0xff]  ;;  %v222_v60 = vld [vmem:[#allocation5 + $0xb0] sm:$0xff] }
  0x31   :  { %146 = vmatpush1.msra.mxu0 %v63_v19  ;;  %338 = vmatprep.subr.mxu1 %v226_v44  ;;  %v207_v58 = vld [vmem:[#allocation5 + $0x38] sm:$0xff]  ;;  %v105_v61 = vld [vmem:[#allocation2 + $0x1b0] sm:$0xff]  ;;  %v104_v63 = vld [vmem:[#allocation2 + $0x1a8] sm:$0xff] }
  0x32   :  { %147 = vmatprep.subr.mxu0 %v62_v20  ;;  %339 = vmatpush3.msra.mxu1 %v210_v46  ;;  %v106_v59 = vld [vmem:[#allocation2 + $0x1b8] sm:$0xff]  ;;  %v206_v62 = vld [vmem:[#allocation5 + $0x30] sm:$0xff]  ;;  %v221_v0 = vld [vmem:[#allocation5 + $0xa8] sm:$0xff] }
  0x33   :  { %148 = vmatpush1.msra.mxu0 %v61_v21  ;;  %340 = vmatprep.subr.mxu1 %v225_v48  ;;  %v103_v1 = vld [vmem:[#allocation2 + $0x1a0] sm:$0xff]  ;;  %v205_v2 = vld [vmem:[#allocation5 + $0x28] sm:$0xff]  ;;  %v102_v3 = vld [vmem:[#allocation2 + $0x198] sm:$0xff] }
  0x34   :  { %149 = vmatprep.subr.mxu0 %v60_v22  ;;  %341 = vmatpush3.msra.mxu1 %v209_v50  ;;  %v220_v4 = vld [vmem:[#allocation5 + $0xa0] sm:$0xff]  ;;  %v101_v5 = vld [vmem:[#allocation2 + $0x190] sm:$0xff]  ;;  %v100_v7 = vld [vmem:[#allocation2 + $0x188] sm:$0xff] }
  0x35   :  { %150 = vmatpush1.msra.mxu0 %v59_v23  ;;  %342 = vmatprep.subr.mxu1 %v224_v52  ;;  %v204_v6 = vld [vmem:[#allocation5 + $0x20] sm:$0xff]  ;;  %v98_v9 = vld [vmem:[#allocation2 + $0x178] sm:$0xff]  ;;  %v97_v10 = vld [vmem:[#allocation2 + $0x170] sm:$0xff] }
  0x36   :  { %151 = vmatprep.subr.mxu0 %v58_v24  ;;  %343 = vmatpush3.msra.mxu1 %v208_v54  ;;  %v99_v8 = vld [vmem:[#allocation2 + $0x180] sm:$0xff]  ;;  %v96_v11 = vld [vmem:[#allocation2 + $0x168] sm:$0xff]  ;;  %v94_v13 = vld [vmem:[#allocation2 + $0x158] sm:$0xff] }
  0x37   :  { %152 = vmatpush1.msra.mxu0 %v57_v29  ;;  %344 = vmatprep.subr.mxu1 %v223_v56  ;;  %v95_v12 = vld [vmem:[#allocation2 + $0x160] sm:$0xff]  ;;  %v93_v14 = vld [vmem:[#allocation2 + $0x150] sm:$0xff]  ;;  %v92_v15 = vld [vmem:[#allocation2 + $0x148] sm:$0xff] }
  0x38   :  { %153 = vmatprep.subr.mxu0 %v56_v31  ;;  %345 = vmatpush3.msra.mxu1 %v207_v58  ;;  %v91_v16 = vld [vmem:[#allocation2 + $0x140] sm:$0xff]  ;;  %v90_v17 = vld [vmem:[#allocation2 + $0x138] sm:$0xff]  ;;  %v89_v18 = vld [vmem:[#allocation2 + $0x130] sm:$0xff] }
  0x39   :  { %154 = vmatpush1.msra.mxu0 %v55_v33  ;;  %346 = vmatprep.subr.mxu1 %v222_v60  ;;  %v88_v19 = vld [vmem:[#allocation2 + $0x128] sm:$0xff]  ;;  %v87_v20 = vld [vmem:[#allocation2 + $0x120] sm:$0xff]  ;;  %v86_v21 = vld [vmem:[#allocation2 + $0x118] sm:$0xff] }
  0x3a   :  { %155 = vmatprep.subr.mxu0 %v54_v35  ;;  %347 = vmatpush3.msra.mxu1 %v206_v62  ;;  %v85_v22 = vld [vmem:[#allocation2 + $0x110] sm:$0xff]  ;;  %v84_v23 = vld [vmem:[#allocation2 + $0x108] sm:$0xff]  ;;  %v83_v24 = vld [vmem:[#allocation2 + $0x100] sm:$0xff]  ;;  %v118_v35 = vshrl.u32 %v117_v34, 7 }
  0x3b   :  { %156 = vmatpush1.msra.mxu0 %v53_v37  ;;  %348 = vmatprep.subr.mxu1 %v221_v0  ;;  %v49_v25 = vld [vmem:[%s494_s0] sm:$0xff]  ;;  %v219_v26 = vld [vmem:[#allocation5 + $0x98] sm:$0xff]  ;;  %v218_v28 = vld [vmem:[#allocation5 + $0x90] sm:$0xff] }
  0x3c   :  { %157 = vmatprep.subr.mxu0 %v52_v39  ;;  %349 = vmatpush3.msra.mxu1 %v205_v2  ;;  %v203_v27 = vld [vmem:[#allocation5 + $0x18] sm:$0xff]  ;;  %v202_v29 = vld [vmem:[#allocation5 + $0x10] sm:$0xff]  ;;  %v217_v30 = vld [vmem:[#allocation5 + $0x88] sm:$0xff]  ;;  %v119_v36 = vsub.s32 0, %v118_v35  ;;  %v123_v38 = vsub.s32 1, %v118_v35 }
  0x3d   :  { %158 = vmatpush1.msra.mxu0 %v51_v41  ;;  %350 = vmatprep.subr.mxu1 %v220_v4  ;;  %v201_v31 = vld [vmem:[#allocation5 + $0x8] sm:$0xff]  ;;  %v216_v32 = vld [vmem:[#allocation5 + $0x80] sm:$0xff] }
  0x3e   :  { %159 = vmatprep.subr.mxu0 %v114_v43  ;;  %351 = vmatpush3.msra.mxu1 %v204_v6  ;;  %v200_v33 = vld [vmem:[#allocation5] sm:$0xff] }
  0x3f   :  { %160 = vmatpush2.msra.mxu0 %v113_v45  ;;  %352 = vmatprep.subr.mxu1 %v219_v26  ;;  %v115_v37 = vld [vmem:[%s496_s2] sm:$0x3]  ;;  %s317_s2 = sshll.u32 %s442_s12, 4  ;;  %s318_s2 = int_to_ptr.vmem [resolvable:$true] %s317_s2 }
  0x40   :  { %161 = vmatprep.subr.mxu0 %v112_v47  ;;  %353 = vmatpush3.msra.mxu1 %v203_v27  ;;  %v120_v39 = vrot.slane %v115_v37, %v119_v36  ;;  %v124_v40 = vrot.slane %v115_v37, %v123_v38  ;;  %v327_v48 = vld [vmem:[%s498_s4] ss:$0 sm:$0xff]  ;;  %s410_s13 = scalar_lea.vmem %s318_s2, 128  ;;  %p415_p11 = scmp.lt.s32.totalorder %s318_s2, %s318_s2 }
  0x41   :  { %162 = vmatpush2.msra.mxu0 %v111_v49  ;;  %354 = vmatprep.subr.mxu1 %v218_v28  ;;  %p411_p10 = scmp.ne.s32.totalorder %s318_s2, %s410_s13  ;;  %p416_p12 = scmp.lt.s32.totalorder %s410_s13, %s410_s13 }
  0x42   :  { %163 = vmatprep.subr.mxu0 %v110_v51  ;;  %355 = vmatpush3.msra.mxu1 %v202_v29 }
  0x43   :  { %164 = vmatpush2.msra.mxu0 %v109_v53  ;;  %356 = vmatprep.subr.mxu1 %v217_v30  ;;  %p417_p13 = por %p416_p12, %p415_p11 }
  0x44   :  { %165 = vmatprep.subr.mxu0 %v108_v55  ;;  %357 = vmatpush3.msra.mxu1 %v201_v31 }
  0x45   :  { %166 = vmatpush2.msra.mxu0 %v107_v57  ;;  %358 = vmatprep.subr.mxu1 %v216_v32  ;;  %p418_p0 = pnand %p417_p13, %p411_p10 }
  0x46   :  { %167 = vmatprep.subr.mxu0 %v106_v59  ;;  %359 = vmatpush3.msra.mxu1 %v200_v33 }
  0x47   :  { %168 = vmatpush2.msra.mxu0 %v105_v61 }
  0x48   :  { %169 = vmatprep.subr.mxu0 %v104_v63 }
  0x49   :  { %170 = vmatpush2.msra.mxu0 %v103_v1 }
  0x4a   :  { %171 = vmatprep.subr.mxu0 %v102_v3 }
  0x4b   :  { %172 = vmatpush2.msra.mxu0 %v101_v5 }
  0x4c   :  { %173 = vmatprep.subr.mxu0 %v100_v7 }
  0x4d   :  { %174 = vmatpush2.msra.mxu0 %v99_v8 }
  0x4e   :  { %175 = vmatprep.subr.mxu0 %v98_v9 }
  0x4f   :  { %176 = vmatpush2.msra.mxu0 %v97_v10 }
  0x50   :  { %177 = vmatprep.subr.mxu0 %v96_v11 }
  0x51   :  { %178 = vmatpush2.msra.mxu0 %v95_v12 }
  0x52   :  { %179 = vmatprep.subr.mxu0 %v94_v13 }
  0x53   :  { %180 = vmatpush2.msra.mxu0 %v93_v14 }
  0x54   :  { %181 = vmatprep.subr.mxu0 %v92_v15 }
  0x55   :  { %182 = vmatpush2.msra.mxu0 %v91_v16 }
  0x56   :  { %183 = vmatprep.subr.mxu0 %v90_v17 }
  0x57   :  { %184 = vmatpush2.msra.mxu0 %v89_v18 }
  0x58   :  { %185 = vmatprep.subr.mxu0 %v88_v19 }
  0x59   :  { %186 = vmatpush2.msra.mxu0 %v87_v20 }
  0x5a   :  { %187 = vmatprep.subr.mxu0 %v86_v21 }
  0x5b   :  { %188 = vmatpush2.msra.mxu0 %v85_v22 }
  0x5c   :  { %189 = vmatprep.subr.mxu0 %v84_v23 }
  0x5d   :  { %190 = vmatpush2.msra.mxu0 %v83_v24 }
  0x5e   :  { %192 = vmatmul.mubr.f32.vlgmr.msra.gmra.mxu0 %v49_v25 }
 0x11e   :  { %v193_v41 = vpop.f32.mrf.mxu0 }
 0x11f   :  { %v194_v42 = vadd.f32 %v193_v41, %v120_v39 }
 0x120   :  { %v195_v43 = vpop.f32.mrf.mxu0 }
 0x121   :  { %v196_v44 = vadd.f32 %v195_v43, %v124_v40  ;;  %v198_v46 = vmax.f32 %v194_v42, 0.0 }
 0x123   :  { %v199_v45 = vmax.f32 %v196_v44, 0.0 }
 0x125   :  { %303 = vmatprep.mubr.f32.mxu1 %v199_v45 }
 0x126   :  { %304 = vmatmul.mubr.f32.vlgmr.msra.gmra.mxu1 %v198_v46 }
 0x1e6   :  { %v360_v47 = vpop.f32.mrf.mxu1 }
 0x1e8   :  { %v361_v49 = vpop.f32.mrf.mxu1 }
 0x1e9   :  { %v362_v50 = vadd.f32 %v361_v49, %v360_v47 }
 0x1eb   :  { %v306_v51 = vadd.f32 %v362_v50, %v327_v48 }
 0x1ed   :  { %v309_v52 = vmax.f32 %v306_v51, 0.0 }
 0x1ef   :  { %310 = vst [vmem:[#allocation7] sm:$0xff] %v309_v52 }
 0x1f0   :  { %421 = shalt.err (!%p418_p0)
}
 0x1f1   :  { %320 = dma.vmem_to_hbm [thread:$0]  %s318_s2, 128, %s499_s5, [#allocation4]  }
 0x1f2   :  { %434 = dma.done.wait [#allocation4], 128  }
 0x1f3   :  { %435 = vsyncadd [#allocation4], 4294967168 }
 0x1f4   :  { %324 = vsyncpa [#allocation3], 1 }
 0x1f5   :  { %325 = vsyncpa [#allocation6], 1 }
 0x1f6   :  { %326 = vsyncpa [#allocation4], 1 }

</bundles_post_ra>
